<compile_context>
chip_gen: v5e
topology: v5e:2x2
jax: 0.10.0
libtpu: 0.0.40
codegen_flags: <defaults>
</compile_context>

<pallas_src>
import functools

import jax
import jax.numpy as jnp
from jax.experimental import pallas as pl
from jax.experimental.pallas import tpu as pltpu

# synthetic tokens-kinds vocabulary indices
PAD_KIND = 0
IDENTIFIER_KIND = 1
OPERATOR_KIND = 2
SEPARATOR_KIND = 3
KEYWORD_KIND = 4


def _round_up(x, m):
    return (x + m - 1) // m * m


def _encoder_kernel(x_ref, w_ref, b_ref, out_ref):
    """Single fused projection + ReLU on packed rows.

    x_ref   : (tm2, 2K) bf16   two token rows packed per kernel row
    w_ref   : (2K, 2E)  bf16   block-diagonal projection weight
    b_ref   : (1,  2E)  f32    bias (duplicated for the two packed rows)
    out_ref : (tm2, 2E) f32    lane-dense (2E >= 128) output tile
    """
    y = jnp.dot(x_ref[...], w_ref[...], preferred_element_type=jnp.float32)
    out_ref[...] = jnp.maximum(y + b_ref[...], 0.0).astype(out_ref.dtype)


def cfg_node_tokenized_seq_expression_encoder(
        token_type_sequences,       # [B, S] int32
        kos_token_index,            # [Nk]   int32 (one per kos token, row-major)
        identifier_index_indices,   # [Ni]   int32 (one per identifier token)
        encoded_identifiers,        # [num_identifiers, D] float32
        params,
        *, tm_rows=2048):
    B, S = token_type_sequences.shape
    M = B * S

    tokens_kinds_emb = params["tokens_kinds_emb"]   # [Vkind, Dt]
    kos_tokens_emb = params["kos_tokens_emb"]       # [Vkos,  D]
    w1 = params["proj_w1"]                          # [Dt, E]
    w2 = params["proj_w2"]                          # [D,  E]
    b = params["proj_b"]                            # [1,  E]
    Dt = tokens_kinds_emb.shape[1]
    D = kos_tokens_emb.shape[1]
    E = w1.shape[1]
    K = Dt + D

    flat_tt = token_type_sequences.reshape(M)

    # --- glue: embedding gathers (data-dependent) -------------------------
    tk_emb = tokens_kinds_emb[flat_tt]                          # [M, Dt]
    kos_emb = kos_tokens_emb[kos_token_index]                   # [Nk, D]
    ident_emb = encoded_identifiers[identifier_index_indices]   # [Ni, D]

    # --- glue: masked_scatter (k-th masked row <- k-th source row) --------
    # Non-masked rows (and the empty-source case) gather an appended zero
    # row, so the two disjoint streams can simply be added into one dense
    # [M, D] kos_or_identifier array; no in-kernel select needed.
    is_ident = flat_tt == IDENTIFIER_KIND
    is_kos = ((flat_tt == OPERATOR_KIND) | (flat_tt == SEPARATOR_KIND)
              | (flat_tt == KEYWORD_KIND))
    ident_rank = jnp.cumsum(is_ident.astype(jnp.int32)) - 1
    kos_rank = jnp.cumsum(is_kos.astype(jnp.int32)) - 1
    ident_pad = jnp.concatenate(
        [ident_emb, jnp.zeros((1, D), ident_emb.dtype)], axis=0)
    kos_pad = jnp.concatenate(
        [kos_emb, jnp.zeros((1, D), kos_emb.dtype)], axis=0)
    ident_idx = jnp.where(is_ident, ident_rank, ident_emb.shape[0])
    kos_idx = jnp.where(is_kos, kos_rank, kos_emb.shape[0])
    koi = ident_pad[ident_idx] + kos_pad[kos_idx]               # [M, D]

    x = jnp.concatenate([tk_emb, koi], axis=-1)                 # [M, K] f32

    # --- row padding / tiling ---------------------------------------------
    # tm2 (packed rows per tile) must be a multiple of 16 (bf16 sublane tile).
    if M <= tm_rows:
        m_pad = _round_up(M, 32)
        tm_eff = m_pad
    else:
        tm_eff = _round_up(tm_rows, 32)
        m_pad = _round_up(M, 2 * tm_eff)   # even grid -> both v7x TCs busy
    if m_pad != M:
        x = jnp.concatenate(
            [x, jnp.zeros((m_pad - M, K), x.dtype)], axis=0)

    m2 = m_pad // 2
    tm2 = tm_eff // 2

    # pack two token rows per kernel row (free row-major reshape) + bf16
    x2 = x.reshape(m2, 2 * K).astype(jnp.bfloat16)              # [M/2, 2K]

    # block-diagonal weight so the single matmul emits 2E-lane-dense rows
    w = jnp.concatenate([w1, w2], axis=0)                       # [K, E]
    zero_w = jnp.zeros_like(w)
    w_blk = jnp.concatenate(
        [jnp.concatenate([w, zero_w], axis=1),
         jnp.concatenate([zero_w, w], axis=1)],
        axis=0).astype(jnp.bfloat16)                            # [2K, 2E]
    b2 = jnp.concatenate([b, b], axis=-1).astype(jnp.float32)   # [1, 2E]

    grid = (m2 // tm2,)
    out2 = pl.pallas_call(
        _encoder_kernel,
        out_shape=jax.ShapeDtypeStruct((m2, 2 * E), jnp.float32),
        grid_spec=pltpu.PrefetchScalarGridSpec(
            num_scalar_prefetch=0,
            grid=grid,
            in_specs=[
                pl.BlockSpec((tm2, 2 * K), lambda i: (i, 0)),
                pl.BlockSpec((2 * K, 2 * E), lambda i: (0, 0)),
                pl.BlockSpec((1, 2 * E), lambda i: (0, 0)),
            ],
            out_specs=pl.BlockSpec((tm2, 2 * E), lambda i: (i, 0)),
        ),
        compiler_params=pltpu.CompilerParams(
            dimension_semantics=("parallel",)),
    )(x2, w_blk, b2)

    # packed [M/2, 2E] is row-major-identical to [M, E]: free reshape
    out = out2.reshape(m_pad, E)[:M]

    # TODO(synk): self.sequence_encoder (external SequenceEncoder module) is not
    # specified here; the projected per-token encodings are returned instead.
    return out.reshape(B, S, E)


def _reference(token_type_sequences, kos_token_index, identifier_index_indices,
               encoded_identifiers, params, *, quantize_bf16=False):
    """Pure-JAX reference mirroring the torch forward (eval mode).

    quantize_bf16=True applies the same bf16 rounding to the matmul inputs as
    the optimized kernel (products of bf16 values are exact in f32), letting
    us check the Pallas kernel itself with a tight tolerance.
    """
    B, S = token_type_sequences.shape
    M = B * S
    flat_tt = token_type_sequences.reshape(M)
    D = params["kos_tokens_emb"].shape[1]

    tk_emb = params["tokens_kinds_emb"][flat_tt]
    kos_emb = params["kos_tokens_emb"][kos_token_index]
    ident_emb = encoded_identifiers[identifier_index_indices]

    is_ident = flat_tt == IDENTIFIER_KIND
    is_kos = ((flat_tt == OPERATOR_KIND) | (flat_tt == SEPARATOR_KIND)
              | (flat_tt == KEYWORD_KIND))
    ident_rank = jnp.cumsum(is_ident.astype(jnp.int32)) - 1
    kos_rank = jnp.cumsum(is_kos.astype(jnp.int32)) - 1
    koi = jnp.zeros((M, D), jnp.float32)
    koi = jnp.where(is_ident[:, None],
                    ident_emb[jnp.clip(ident_rank, 0, ident_emb.shape[0] - 1)],
                    koi)
    koi = jnp.where(is_kos[:, None],
                    kos_emb[jnp.clip(kos_rank, 0, kos_emb.shape[0] - 1)],
                    koi)
    x = jnp.concatenate([tk_emb, koi], axis=-1)
    w = jnp.concatenate([params["proj_w1"], params["proj_w2"]], axis=0)
    if quantize_bf16:
        x = x.astype(jnp.bfloat16).astype(jnp.float32)
        w = w.astype(jnp.bfloat16).astype(jnp.float32)
    y = jnp.maximum(x @ w + params["proj_b"], 0.0)
    return y.reshape(B, S, -1)


if __name__ == "__main__":
    # --- hyper-parameters (from module __init__) --------------------------
    B, S = 2, 16                    # batch of token sequences, sequence length
    Dt = 16                         # token_type_embedding_dim
    D = 32                          # kos_token_embedding_dim == identifier_embedding_dim
    E = 64                          # token_encoding_dim
    V_KIND = 8                      # len(tokens_kinds_vocab)
    V_KOS = 16                      # len(kos_tokens_vocab)
    NUM_IDENTIFIERS = 10            # rows of encoded_identifiers

    key = jax.random.PRNGKey(0)
    ks = jax.random.split(key, 8)

    # --- inputs ------------------------------------------------------------
    token_type = jax.random.randint(ks[0], (B, S), 0, 5).astype(jnp.int32)
    # guarantee at least one identifier and one kos token
    token_type = token_type.at[0, 0].set(IDENTIFIER_KIND)
    token_type = token_type.at[0, 1].set(OPERATOR_KIND)

    n_ident = int(jnp.sum(token_type == IDENTIFIER_KIND))
    n_kos = int(jnp.sum((token_type == OPERATOR_KIND)
                        | (token_type == SEPARATOR_KIND)
                        | (token_type == KEYWORD_KIND)))

    kos_token_index = jax.random.randint(ks[1], (n_kos,), 1, V_KOS).astype(jnp.int32)
    identifier_index_indices = jax.random.randint(
        ks[2], (n_ident,), 0, NUM_IDENTIFIERS).astype(jnp.int32)
    encoded_identifiers = jax.random.normal(ks[3], (NUM_IDENTIFIERS, D),
                                            dtype=jnp.float32)

    # --- deterministic parameter init (embedding pad rows zeroed) ----------
    tokens_kinds_emb = 0.1 * jax.random.normal(ks[4], (V_KIND, Dt), jnp.float32)
    tokens_kinds_emb = tokens_kinds_emb.at[PAD_KIND].set(0.0)
    kos_tokens_emb = 0.1 * jax.random.normal(ks[5], (V_KOS, D), jnp.float32)
    kos_tokens_emb = kos_tokens_emb.at[0].set(0.0)   # kos '<PAD>' row
    proj_w = 0.1 * jax.random.normal(ks[6], (Dt + D, E), jnp.float32)
    proj_b = 0.1 * jax.random.normal(ks[7], (1, E), jnp.float32)
    params = {
        "tokens_kinds_emb": tokens_kinds_emb,
        "kos_tokens_emb": kos_tokens_emb,
        "proj_w1": proj_w[:Dt],
        "proj_w2": proj_w[Dt:],
        "proj_b": proj_b,
    }

    run = jax.jit(functools.partial(cfg_node_tokenized_seq_expression_encoder,
                                    params=params))
    out = run(token_type, kos_token_index, identifier_index_indices,
              encoded_identifiers)
    out = jax.block_until_ready(out)
    assert out.shape == (B, S, E)

    # tight check vs a reference using the same bf16-rounded matmul inputs
    ref_q = _reference(token_type, kos_token_index, identifier_index_indices,
                       encoded_identifiers, params, quantize_bf16=True)
    assert bool(jnp.allclose(out, ref_q, atol=1e-4, rtol=1e-4))

    # loose check vs the pure-f32 torch-equivalent math (bf16 quantization of
    # activations/weights is a deliberate perf optimization)
    ref_f = _reference(token_type, kos_token_index, identifier_index_indices,
                       encoded_identifiers, params, quantize_bf16=False)
    assert bool(jnp.allclose(out, ref_f, atol=5e-2, rtol=5e-2))

    print("KERNEL_OK")
</pallas_src>

<mosaic_0001>
module attributes {stable_mosaic.version = 11 : i64} {
  func.func @_encoder_kernel(%arg0: i32, %arg1: memref<16x96xbf16, #tpu.memory_space<vmem>>, %arg2: memref<96x128xbf16, #tpu.memory_space<vmem>>, %arg3: memref<1x128xf32, #tpu.memory_space<vmem>>, %arg4: memref<16x128xf32, #tpu.memory_space<vmem>>) attributes {dimension_semantics = [#tpu.dimension_semantics<parallel>], iteration_bounds = array<i64: 1>, scalar_prefetch = 0 : i64, scratch_operands = 0 : i64, tpu.core_type = #tpu.core_type<tc>, window_params = [{transform_indices = @transform_0, window_bounds = array<i64: 16, 96>}, {pipeline_mode = #tpu.pipeline_mode<synchronous>, transform_indices = @transform_1, window_bounds = array<i64: 96, 128>}, {pipeline_mode = #tpu.pipeline_mode<synchronous>, transform_indices = @transform_2, window_bounds = array<i64: 1, 128>}, {transform_indices = @transform_3, window_bounds = array<i64: 16, 128>}]} {
    %c0 = arith.constant 0 : index
    %c0_0 = arith.constant 0 : index
    %0 = vector.load %arg1[%c0, %c0_0] : memref<16x96xbf16, #tpu.memory_space<vmem>>, vector<16x96xbf16>
    %c0_1 = arith.constant 0 : index
    %c0_2 = arith.constant 0 : index
    %1 = vector.load %arg2[%c0_1, %c0_2] : memref<96x128xbf16, #tpu.memory_space<vmem>>, vector<96x128xbf16>
    %cst = arith.constant dense<0.000000e+00> : vector<16x128xf32>
    %2 = tpu.matmul %0, %1, %cst {dimension_numbers = #tpu.dot_dimension_numbers<[1], [0], [0], [1], [0, 0, 1, 1], [], []>} : vector<16x96xbf16>, vector<96x128xbf16>, vector<16x128xf32> -> vector<16x128xf32>
    %c0_3 = arith.constant 0 : index
    %c0_4 = arith.constant 0 : index
    %3 = vector.load %arg3[%c0_3, %c0_4] : memref<1x128xf32, #tpu.memory_space<vmem>>, vector<1x128xf32>
    %4 = vector.broadcast %3 : vector<1x128xf32> to vector<16x128xf32>
    %5 = arith.addf %2, %4 : vector<16x128xf32>
    %cst_5 = arith.constant 0.000000e+00 : f32
    %6 = vector.broadcast %cst_5 : f32 to vector<16x128xf32>
    %7 = arith.maximumf %5, %6 : vector<16x128xf32>
    %c0_6 = arith.constant 0 : index
    %c0_7 = arith.constant 0 : index
    %8 = vector.load %arg4[%c0_6, %c0_7] : memref<16x128xf32, #tpu.memory_space<vmem>>, vector<16x128xf32>
    tpu.vector_store %arg4[%c0_6, %c0_7], %7 {strides = array<i32>} : memref<16x128xf32, #tpu.memory_space<vmem>>, vector<16x128xf32>,
    return
  }
  func.func @transform_0(%arg0: i32) -> (i32, i32) {
    %c0_i32 = arith.constant 0 : i32
    %c0_i32_0 = arith.constant 0 : i32
    return %arg0, %c0_i32 : i32, i32
  }
  func.func @transform_1(%arg0: i32) -> (i32, i32) {
    %c0_i32 = arith.constant 0 : i32
    %c0_i32_0 = arith.constant 0 : i32
    %c0_i32_1 = arith.constant 0 : i32
    return %c0_i32, %c0_i32_0 : i32, i32
  }
  func.func @transform_2(%arg0: i32) -> (i32, i32) {
    %c0_i32 = arith.constant 0 : i32
    %c0_i32_0 = arith.constant 0 : i32
    %c0_i32_1 = arith.constant 0 : i32
    return %c0_i32, %c0_i32_0 : i32, i32
  }
  func.func @transform_3(%arg0: i32) -> (i32, i32) {
    %c0_i32 = arith.constant 0 : i32
    %c0_i32_0 = arith.constant 0 : i32
    return %arg0, %c0_i32 : i32, i32
  }
}

</mosaic_0001>

<bundles_post_ra>
// kernel: cfg_node_tokenized_seq_expression_encoder.1
= control target key start
LH: loop header
LB: loop body
LE: loop exit
PB: predicated region body
PF: predicated region fallthrough
CT: control target
= control target key end

     0   :  { %vm74_vm0 = vcmask 785408   ;;  %s187_s1 = inlined_call_operand.vmem [shape: bf16[96,128], index: 1, kind: input, shape index: {}]   ;;  %s188_s2 = inlined_call_operand.vmem [shape: f32[1,128], index: 2, kind: input, shape index: {}]   ;;  %s189_s0 = inlined_call_operand.vmem [shape: bf16[16,96], index: 0, kind: input, shape index: {}]   ;;  %s190_s3 = inlined_call_operand.vmem [shape: f32[16,128], index: 3, kind: output, shape index: {}]  }
   0x1   :  { %v135_v0 = vld [vmem:[%s187_s1 + $0x28] sm:$0xff]  ;;  %v134_v1 = vld [vmem:[%s187_s1 + $0x20] sm:$0xff]  ;;  %v133_v2 = vld [vmem:[%s187_s1 + $0x18] sm:$0xff] }
   0x2   :  { %80 = vmatpush.bf16.msra.mxu0 %v135_v0  ;;  %v132_v3 = vld [vmem:[%s187_s1 + $0x10] sm:$0xff]  ;;  %v131_v4 = vld [vmem:[%s187_s1 + $0x8] sm:$0xff]  ;;  %v130_v5 = vld [vmem:[%s187_s1] sm:$0xff] }
   0x3   :  { %v129_v6 = vld [vmem:[%s189_s0] sm:$0xff] }
   0x4   :  { %v136_v7 = vld [vmem:[%s188_s2] ss:$0 sm:$0xff] }
   0x6   :  { %81 = vmatpush.bf16.msra.mxu0 %v134_v1 }
   0xa   :  { %82 = vmatpush.bf16.msra.mxu0 %v133_v2 }
   0xe   :  { %83 = vmatpush.bf16.msra.mxu0 %v132_v3 }
  0x12   :  { %84 = vmatpush.bf16.msra.mxu0 %v131_v4 }
  0x16   :  { %85 = vmatpush.bf16.msra.mxu0 %v130_v5 }
  0x19   :  { %128 = vmatmul.msk.bf16.vlgmr.msra.gmra.mxu0 %vm74_vm0, %v129_v6 }
  0x96   :  { %v87_v8 = vpop.f32.mrf.mxu0 }
  0x97   :  { %v88_v9 = vadd.f32 %v136_v7, %v87_v8 }
  0x99   :  { %v92_v10 = vmax.f32 %v88_v9, 0.0 }
  0x9b   :  { %94 = vst [vmem:[%s190_s3] sm:$0xff] %v92_v10 }
  0x9e   :  { %v89_v11 = vpop.f32.mrf.mxu0 }
  0x9f   :  { %v90_v12 = vadd.f32 %v136_v7, %v89_v11 }
  0xa1   :  { %v93_v13 = vmax.f32 %v90_v12, 0.0 }
  0xa3   :  { %95 = vst [vmem:[%s190_s3 + $0x8] sm:$0xff] %v93_v13 }

</bundles_post_ra>
